<compile_context>
chip_gen: v6e
topology: v6e:2x2x1
jax: 0.10.0
libtpu: 0.0.40
codegen_flags: <defaults>
</compile_context>

<pallas_src>
import jax
import jax.numpy as jnp
from jax.experimental import pallas as pl
from jax.experimental.pallas import tpu as pltpu

LANES = 128  # padded feature width (one vreg lane-width / MXU tile width)


def _round_up(x: int, m: int) -> int:
    return ((x + m - 1) // m) * m


def _choose_tile_m(B: int) -> int:
    """Batch tile: minimal 8-aligned tile for small B; for large B the biggest
    multiple of 256 up to 2048 that still leaves >= 2 grid steps (v7x TCs)."""
    if B <= 256:
        return _round_up(B, 8)
    half = _round_up((B + 1) // 2, 256)
    return min(2048, half)


def _ik_mlp_kernel(x_ref, wp_ref, bp_ref, o_ref, xpad_ref):
    """x_ref:  (TM, in_size)  f32   — raw input tile
       wp_ref: (L, 128, 128)  bf16  — zero-padded packed weights (W.T per layer)
       bp_ref: (L, 1, 128)    f32   — zero-padded packed biases
       o_ref:  (TM, out_size) f32   — narrow output tile
       xpad_ref: (TM, 128)    bf16  — VMEM scratch for the lane-padded input."""
    n_layers = wp_ref.shape[0]
    in_size = x_ref.shape[1]
    out_size = o_ref.shape[1]

    # Lane-pad the narrow f32 input tile to 128 bf16 lanes entirely in VMEM:
    # zero the slab, then overwrite the first `in_size` lanes.  The slab is
    # re-zeroed every grid step so megacore ("parallel") sharding never sees
    # an uninitialised pad region.
    xpad_ref[...] = jnp.zeros_like(xpad_ref)
    xpad_ref[:, :in_size] = x_ref[...].astype(jnp.bfloat16)
    h = xpad_ref[...]  # (TM, 128) bf16; pad lanes are exactly zero

    # Hidden layers: bf16 MXU matmul with f32 accumulation, bias + ReLU in f32.
    for layer in range(n_layers - 1):
        acc = jnp.dot(h, wp_ref[layer], preferred_element_type=jnp.float32)
        acc = jnp.maximum(acc + bp_ref[layer], 0.0)
        h = acc.astype(jnp.bfloat16)

    # Final layer: no activation; store only the logical out_size lanes.
    acc = jnp.dot(h, wp_ref[n_layers - 1], preferred_element_type=jnp.float32)
    acc = acc + bp_ref[n_layers - 1]
    o_ref[...] = acc[:, :out_size].astype(o_ref.dtype)


def pack_params(params):
    """Pack list of (W_t (in,out) f32, b (1,out) f32) into padded VMEM slabs."""
    n = len(params)
    wp = jnp.zeros((n, LANES, LANES), jnp.bfloat16)
    bp = jnp.zeros((n, 1, LANES), jnp.float32)
    for i, (w, b) in enumerate(params):
        fi, fo = w.shape
        wp = wp.at[i, :fi, :fo].set(w.astype(jnp.bfloat16))
        bp = bp.at[i, 0, :fo].set(b.reshape(-1).astype(jnp.float32))
    return wp, bp


def ik_model_forward(x, wp, bp, out_size):
    """x: (B, input_size) f32; wp: (L,128,128) bf16; bp: (L,1,128) f32."""
    B, in_size = x.shape
    n_layers = wp.shape[0]

    TM = _choose_tile_m(B)
    B_pad = _round_up(B, TM)
    if B_pad != B:
        # Only the batch dim is padded (tiny); feature dim stays at in_size.
        x = jnp.pad(x, ((0, B_pad - B), (0, 0)))

    flops = 2 * B_pad * LANES * LANES * n_layers
    bytes_accessed = (
        B_pad * in_size * 4        # raw f32 input
        + wp.size * 2              # bf16 packed weights (DMA'd once)
        + bp.size * 4              # f32 packed biases (DMA'd once)
        + B_pad * out_size * 4     # narrow f32 output
    )

    out = pl.pallas_call(
        _ik_mlp_kernel,
        out_shape=jax.ShapeDtypeStruct((B_pad, out_size), jnp.float32),
        grid=(B_pad // TM,),
        in_specs=[
            # x tile per grid step; minor dim == full array dim (no lane pad).
            pl.BlockSpec((TM, in_size), lambda i: (i, 0)),
            # Weights / biases: constant block index -> DMA'd once, reused.
            pl.BlockSpec((n_layers, LANES, LANES), lambda i: (0, 0, 0)),
            pl.BlockSpec((n_layers, 1, LANES), lambda i: (0, 0, 0)),
        ],
        out_specs=pl.BlockSpec((TM, out_size), lambda i: (i, 0)),
        scratch_shapes=[pltpu.VMEM((TM, LANES), jnp.bfloat16)],
        compiler_params=pltpu.CompilerParams(
            dimension_semantics=("parallel",)),
        cost_estimate=pl.CostEstimate(
            flops=flops, transcendentals=0, bytes_accessed=bytes_accessed),
    )(x, wp, bp)

    # Drop padded batch rows (no lane slicing needed; output is already narrow).
    return out[:B] if B_pad != B else out


def init_params(key, input_size, hidden_sizes, output_size):
    """Deterministic init matching nn.Linear shapes (weights stored pre-transposed)."""
    dims = [input_size] + list(hidden_sizes) + [output_size]
    params = []
    for i in range(len(dims) - 1):
        fan_in, fan_out = dims[i], dims[i + 1]
        key, kw, kb = jax.random.split(key, 3)
        bound = 1.0 / jnp.sqrt(fan_in)
        # PyTorch Linear stores W as (out, in); we store W.T = (in, out).
        w_t = jax.random.uniform(kw, (fan_in, fan_out), jnp.float32, -bound, bound)
        b = jax.random.uniform(kb, (1, fan_out), jnp.float32, -bound, bound)
        params.append((w_t, b))
    return params


if __name__ == "__main__":
    # Small shapes consistent with the IK regression net:
    # pose input (x, y, z, rx, ry, rz) -> 6 joint angles.
    input_size = 6
    hidden_sizes = [32, 64, 64, 32]
    output_size = 6
    batch = 8

    key = jax.random.PRNGKey(0)
    key, kx = jax.random.split(key)
    x = jax.random.normal(kx, (batch, input_size), jnp.float32)

    params = init_params(key, input_size, hidden_sizes, output_size)
    wp, bp = pack_params(params)

    out = ik_model_forward(x, wp, bp, output_size)
    jax.block_until_ready(out)

    # Pure-JAX reference with matching bf16 quantization of weights/activations
    # (matmuls accumulate in f32; bias-add/ReLU in f32), same as the kernel.
    ref = x.astype(jnp.bfloat16).astype(jnp.float32)
    for i, (w, b) in enumerate(params):
        wq = w.astype(jnp.bfloat16).astype(jnp.float32)
        ref = ref @ wq + b
        if i < len(params) - 1:
            ref = jnp.maximum(ref, 0.0).astype(jnp.bfloat16).astype(jnp.float32)

    assert out.shape == (batch, output_size)
    assert jnp.allclose(out, ref, atol=5e-3, rtol=5e-3), (
        f"max abs err = {jnp.max(jnp.abs(out - ref))}")

    print("KERNEL_OK")
</pallas_src>

<mosaic_0001>
module attributes {stable_mosaic.version = 11 : i64} {
  func.func @_ik_mlp_kernel(%arg0: i32, %arg1: memref<8x6xf32, #tpu.memory_space<vmem>>, %arg2: memref<5x128x128xbf16, #tpu.memory_space<vmem>>, %arg3: memref<5x1x128xf32, #tpu.memory_space<vmem>>, %arg4: memref<8x6xf32, #tpu.memory_space<vmem>>, %arg5: memref<8x128xbf16, #tpu.memory_space<vmem>>) attributes {dimension_semantics = [#tpu.dimension_semantics<parallel>], iteration_bounds = array<i64: 1>, scalar_prefetch = 0 : i64, scratch_operands = 1 : i64, tpu.core_type = #tpu.core_type<tc>, window_params = [{transform_indices = @transform_0, window_bounds = array<i64: 8, 6>}, {pipeline_mode = #tpu.pipeline_mode<synchronous>, transform_indices = @transform_1, window_bounds = array<i64: 5, 128, 128>}, {pipeline_mode = #tpu.pipeline_mode<synchronous>, transform_indices = @transform_2, window_bounds = array<i64: 5, 1, 128>}, {transform_indices = @transform_3, window_bounds = array<i64: 8, 6>}]} {
    %cst = arith.constant 0.000000e+00 : bf16
    %0 = vector.broadcast %cst : bf16 to vector<8x128xbf16>
    %c0 = arith.constant 0 : index
    %c0_0 = arith.constant 0 : index
    %1 = vector.load %arg5[%c0, %c0_0] : memref<8x128xbf16, #tpu.memory_space<vmem>>, vector<8x128xbf16>
    tpu.vector_store %arg5[%c0, %c0_0], %0 {strides = array<i32>} : memref<8x128xbf16, #tpu.memory_space<vmem>>, vector<8x128xbf16>,
    %c0_1 = arith.constant 0 : index
    %c0_2 = arith.constant 0 : index
    %2 = vector.load %arg1[%c0_1, %c0_2] : memref<8x6xf32, #tpu.memory_space<vmem>>, vector<8x6xf32>
    %3 = arith.truncf %2 : vector<8x6xf32> to vector<8x6xbf16>
    %c0_3 = arith.constant 0 : index
    %c0_4 = arith.constant 0 : index
    %4 = vector.load %arg5[%c0_3, %c0_4] : memref<8x128xbf16, #tpu.memory_space<vmem>>, vector<8x6xbf16>
    tpu.vector_store %arg5[%c0_3, %c0_4], %3 {strides = array<i32>} : memref<8x128xbf16, #tpu.memory_space<vmem>>, vector<8x6xbf16>,
    %c0_5 = arith.constant 0 : index
    %c0_6 = arith.constant 0 : index
    %5 = vector.load %arg5[%c0_5, %c0_6] : memref<8x128xbf16, #tpu.memory_space<vmem>>, vector<8x128xbf16>
    %c0_7 = arith.constant 0 : index
    %c0_8 = arith.constant 0 : index
    %c0_9 = arith.constant 0 : index
    %6 = vector.load %arg2[%c0_7, %c0_8, %c0_9] : memref<5x128x128xbf16, #tpu.memory_space<vmem>>, vector<1x128x128xbf16>
    %7 = vector.shape_cast %6 : vector<1x128x128xbf16> to vector<128x128xbf16>
    %cst_10 = arith.constant dense<0.000000e+00> : vector<8x128xf32>
    %8 = tpu.matmul %5, %7, %cst_10 {dimension_numbers = #tpu.dot_dimension_numbers<[1], [0], [0], [1], [0, 0, 1, 1], [], []>} : vector<8x128xbf16>, vector<128x128xbf16>, vector<8x128xf32> -> vector<8x128xf32>
    %c0_11 = arith.constant 0 : index
    %c0_12 = arith.constant 0 : index
    %c0_13 = arith.constant 0 : index
    %9 = vector.load %arg3[%c0_11, %c0_12, %c0_13] : memref<5x1x128xf32, #tpu.memory_space<vmem>>, vector<1x1x128xf32>
    %10 = vector.shape_cast %9 : vector<1x1x128xf32> to vector<1x128xf32>
    %11 = vector.broadcast %10 : vector<1x128xf32> to vector<8x128xf32>
    %12 = arith.addf %8, %11 : vector<8x128xf32>
    %cst_14 = arith.constant 0.000000e+00 : f32
    %13 = vector.broadcast %cst_14 : f32 to vector<8x128xf32>
    %14 = arith.maximumf %12, %13 : vector<8x128xf32>
    %15 = arith.truncf %14 : vector<8x128xf32> to vector<8x128xbf16>
    %c1 = arith.constant 1 : index
    %c0_15 = arith.constant 0 : index
    %c0_16 = arith.constant 0 : index
    %16 = vector.load %arg2[%c1, %c0_15, %c0_16] : memref<5x128x128xbf16, #tpu.memory_space<vmem>>, vector<1x128x128xbf16>
    %17 = vector.shape_cast %16 : vector<1x128x128xbf16> to vector<128x128xbf16>
    %cst_17 = arith.constant dense<0.000000e+00> : vector<8x128xf32>
    %18 = tpu.matmul %15, %17, %cst_17 {dimension_numbers = #tpu.dot_dimension_numbers<[1], [0], [0], [1], [0, 0, 1, 1], [], []>} : vector<8x128xbf16>, vector<128x128xbf16>, vector<8x128xf32> -> vector<8x128xf32>
    %c1_18 = arith.constant 1 : index
    %c0_19 = arith.constant 0 : index
    %c0_20 = arith.constant 0 : index
    %19 = vector.load %arg3[%c1_18, %c0_19, %c0_20] : memref<5x1x128xf32, #tpu.memory_space<vmem>>, vector<1x1x128xf32>
    %20 = vector.shape_cast %19 : vector<1x1x128xf32> to vector<1x128xf32>
    %21 = vector.broadcast %20 : vector<1x128xf32> to vector<8x128xf32>
    %22 = arith.addf %18, %21 : vector<8x128xf32>
    %cst_21 = arith.constant 0.000000e+00 : f32
    %23 = vector.broadcast %cst_21 : f32 to vector<8x128xf32>
    %24 = arith.maximumf %22, %23 : vector<8x128xf32>
    %25 = arith.truncf %24 : vector<8x128xf32> to vector<8x128xbf16>
    %c2 = arith.constant 2 : index
    %c0_22 = arith.constant 0 : index
    %c0_23 = arith.constant 0 : index
    %26 = vector.load %arg2[%c2, %c0_22, %c0_23] : memref<5x128x128xbf16, #tpu.memory_space<vmem>>, vector<1x128x128xbf16>
    %27 = vector.shape_cast %26 : vector<1x128x128xbf16> to vector<128x128xbf16>
    %cst_24 = arith.constant dense<0.000000e+00> : vector<8x128xf32>
    %28 = tpu.matmul %25, %27, %cst_24 {dimension_numbers = #tpu.dot_dimension_numbers<[1], [0], [0], [1], [0, 0, 1, 1], [], []>} : vector<8x128xbf16>, vector<128x128xbf16>, vector<8x128xf32> -> vector<8x128xf32>
    %c2_25 = arith.constant 2 : index
    %c0_26 = arith.constant 0 : index
    %c0_27 = arith.constant 0 : index
    %29 = vector.load %arg3[%c2_25, %c0_26, %c0_27] : memref<5x1x128xf32, #tpu.memory_space<vmem>>, vector<1x1x128xf32>
    %30 = vector.shape_cast %29 : vector<1x1x128xf32> to vector<1x128xf32>
    %31 = vector.broadcast %30 : vector<1x128xf32> to vector<8x128xf32>
    %32 = arith.addf %28, %31 : vector<8x128xf32>
    %cst_28 = arith.constant 0.000000e+00 : f32
    %33 = vector.broadcast %cst_28 : f32 to vector<8x128xf32>
    %34 = arith.maximumf %32, %33 : vector<8x128xf32>
    %35 = arith.truncf %34 : vector<8x128xf32> to vector<8x128xbf16>
    %c3 = arith.constant 3 : index
    %c0_29 = arith.constant 0 : index
    %c0_30 = arith.constant 0 : index
    %36 = vector.load %arg2[%c3, %c0_29, %c0_30] : memref<5x128x128xbf16, #tpu.memory_space<vmem>>, vector<1x128x128xbf16>
    %37 = vector.shape_cast %36 : vector<1x128x128xbf16> to vector<128x128xbf16>
    %cst_31 = arith.constant dense<0.000000e+00> : vector<8x128xf32>
    %38 = tpu.matmul %35, %37, %cst_31 {dimension_numbers = #tpu.dot_dimension_numbers<[1], [0], [0], [1], [0, 0, 1, 1], [], []>} : vector<8x128xbf16>, vector<128x128xbf16>, vector<8x128xf32> -> vector<8x128xf32>
    %c3_32 = arith.constant 3 : index
    %c0_33 = arith.constant 0 : index
    %c0_34 = arith.constant 0 : index
    %39 = vector.load %arg3[%c3_32, %c0_33, %c0_34] : memref<5x1x128xf32, #tpu.memory_space<vmem>>, vector<1x1x128xf32>
    %40 = vector.shape_cast %39 : vector<1x1x128xf32> to vector<1x128xf32>
    %41 = vector.broadcast %40 : vector<1x128xf32> to vector<8x128xf32>
    %42 = arith.addf %38, %41 : vector<8x128xf32>
    %cst_35 = arith.constant 0.000000e+00 : f32
    %43 = vector.broadcast %cst_35 : f32 to vector<8x128xf32>
    %44 = arith.maximumf %42, %43 : vector<8x128xf32>
    %45 = arith.truncf %44 : vector<8x128xf32> to vector<8x128xbf16>
    %c4 = arith.constant 4 : index
    %c0_36 = arith.constant 0 : index
    %c0_37 = arith.constant 0 : index
    %46 = vector.load %arg2[%c4, %c0_36, %c0_37] : memref<5x128x128xbf16, #tpu.memory_space<vmem>>, vector<1x128x128xbf16>
    %47 = vector.shape_cast %46 : vector<1x128x128xbf16> to vector<128x128xbf16>
    %cst_38 = arith.constant dense<0.000000e+00> : vector<8x128xf32>
    %48 = tpu.matmul %45, %47, %cst_38 {dimension_numbers = #tpu.dot_dimension_numbers<[1], [0], [0], [1], [0, 0, 1, 1], [], []>} : vector<8x128xbf16>, vector<128x128xbf16>, vector<8x128xf32> -> vector<8x128xf32>
    %c4_39 = arith.constant 4 : index
    %c0_40 = arith.constant 0 : index
    %c0_41 = arith.constant 0 : index
    %49 = vector.load %arg3[%c4_39, %c0_40, %c0_41] : memref<5x1x128xf32, #tpu.memory_space<vmem>>, vector<1x1x128xf32>
    %50 = vector.shape_cast %49 : vector<1x1x128xf32> to vector<1x128xf32>
    %51 = vector.broadcast %50 : vector<1x128xf32> to vector<8x128xf32>
    %52 = arith.addf %48, %51 : vector<8x128xf32>
    %53 = vector.extract_strided_slice %52 {offsets = [0, 0], sizes = [8, 6], strides = [1, 1]} : vector<8x128xf32> to vector<8x6xf32>
    %c0_42 = arith.constant 0 : index
    %c0_43 = arith.constant 0 : index
    %54 = vector.load %arg4[%c0_42, %c0_43] : memref<8x6xf32, #tpu.memory_space<vmem>>, vector<8x6xf32>
    tpu.vector_store %arg4[%c0_42, %c0_43], %53 {strides = array<i32>} : memref<8x6xf32, #tpu.memory_space<vmem>>, vector<8x6xf32>,
    return
  }
  func.func @transform_0(%arg0: i32) -> (i32, i32) {
    %c0_i32 = arith.constant 0 : i32
    %c0_i32_0 = arith.constant 0 : i32
    return %arg0, %c0_i32 : i32, i32
  }
  func.func @transform_1(%arg0: i32) -> (i32, i32, i32) {
    %c0_i32 = arith.constant 0 : i32
    %c0_i32_0 = arith.constant 0 : i32
    %c0_i32_1 = arith.constant 0 : i32
    %c0_i32_2 = arith.constant 0 : i32
    return %c0_i32, %c0_i32_0, %c0_i32_1 : i32, i32, i32
  }
  func.func @transform_2(%arg0: i32) -> (i32, i32, i32) {
    %c0_i32 = arith.constant 0 : i32
    %c0_i32_0 = arith.constant 0 : i32
    %c0_i32_1 = arith.constant 0 : i32
    %c0_i32_2 = arith.constant 0 : i32
    return %c0_i32, %c0_i32_0, %c0_i32_1 : i32, i32, i32
  }
  func.func @transform_3(%arg0: i32) -> (i32, i32) {
    %c0_i32 = arith.constant 0 : i32
    %c0_i32_0 = arith.constant 0 : i32
    return %arg0, %c0_i32 : i32, i32
  }
}

</mosaic_0001>

<bundles_post_ra>
// kernel: tpu_custom_call.1
= control target key start
LH: loop header
LB: loop body
LE: loop exit
PB: predicated region body
PF: predicated region fallthrough
CT: control target
= control target key end

     0   :  { %8 = vsyncpa [#allocation4], 0  ;;  %s1070_s0 = inlined_call_operand.hbm [shape: f32[8,6], index: 0, kind: input, shape index: {}]   ;;  %s1071_s1 = inlined_call_operand.hbm [shape: bf16[5,128,128], index: 1, kind: input, shape index: {}]   ;;  %s1072_s2 = inlined_call_operand.hbm [shape: f32[5,1,128], index: 2, kind: input, shape index: {}]   ;;  %s1073_s3 = inlined_call_operand.hbm [shape: f32[8,6], index: 3, kind: output, shape index: {}]  }
   0x1   :  { %9 = vsyncpa [#allocation7], 0 }
   0x2   :  { %10 = vsyncpa [#allocation5], 0  ;;  %s977_s12 = smov [#allocation6]  }
   0x3   :  { %s26_s13 = sshll.u32 %s977_s12, 4  ;;  %s27_s13 = int_to_ptr.vmem [resolvable:$true] %s26_s13 }
   0x4   :  { %s899_s14 = scalar_lea.vmem %s27_s13, 5120  ;;  %p904_p1 = scmp.lt.s32.totalorder %s27_s13, %s27_s13 }
   0x5   :  { %p900_p0 = scmp.ne.s32.totalorder %s27_s13, %s899_s14  ;;  %p905_p2 = scmp.lt.s32.totalorder %s899_s14, %s899_s14 }
   0x7   :  { %p906_p3 = por %p905_p2, %p904_p1 }
   0x9   :  { %p907_p4 = pnand %p906_p3, %p900_p0 }
   0xb   :  { %910 = shalt.err (!%p907_p4)
}
   0xc   :  { %s978_s15 = smov 64   ;;  %s979_s16 = smov 4  }
   0xd   :  { %32 = dma.hbm_to_vmem [thread:$0]  %s1071_s1, 5120, %s27_s13, [#allocation7], %s978_s15, %s978_s15, %s979_s16  }
   0xe   :  { %s980_s19 = smov [#allocation3]   ;;  %s981_s21 = smov [#allocation8]  }
   0xf   :  { %s17_s20 = sshll.u32 %s980_s19, 4  ;;  %s38_s22 = sshll.u32 %s981_s21, 4  ;;  %s18_s20 = int_to_ptr.vmem [resolvable:$true] %s17_s20  ;;  %s39_s22 = int_to_ptr.vmem [resolvable:$true] %s38_s22 }
  0x10   :  { %s919_s23 = scalar_lea.vmem %s18_s20, 128  ;;  %p924_p6 = scmp.lt.s32.totalorder %s18_s20, %s18_s20 }
  0x11   :  { %p920_p5 = scmp.ne.s32.totalorder %s18_s20, %s919_s23  ;;  %p925_p7 = scmp.lt.s32.totalorder %s919_s23, %s919_s23 }
  0x13   :  { %p926_p8 = por %p925_p7, %p924_p6 }
  0x15   :  { %p927_p9 = pnand %p926_p8, %p920_p5 }
  0x17   :  { %930 = shalt.err (!%p927_p9)
}
  0x18   :  { %20 = dma.hbm_to_vmem [thread:$0]  %s1070_s0, 128, %s18_s20, [#allocation4]  }
  0x19   :  { %s939_s26 = scalar_lea.vmem %s39_s22, 80  ;;  %s943_s1 = scalar_lea.vmem %s39_s22, 96 }
  0x1a   :  { %p940_p10 = scmp.ne.s32.totalorder %s39_s22, %s939_s26  ;;  %p944_p11 = scmp.lt.s32.totalorder %s39_s22, %s39_s22 }
  0x1b   :  { %p945_p12 = scmp.lt.s32.totalorder %s943_s1, %s939_s26 }
  0x1d   :  { %p946_p13 = por %p945_p12, %p944_p11 }
  0x1f   :  { %p947_p0 = pnand %p946_p13, %p940_p10 }
  0x21   :  { %950 = shalt.err (!%p947_p0)
}
  0x22   :  { %s982_s27 = smov 16   ;;  %s983_s28 = smov 1  }
  0x23   :  { %44 = dma.hbm_to_vmem [thread:$0]  %s1072_s2, 80, %s39_s22, [#allocation7], %s982_s27, %s982_s27, %s983_s28  }
  0x24   :  { %971 = dma.done.wait [#allocation4], 128  }
  0x25   :  { %972 = vsyncadd [#allocation4], 4294967168 }
  0x26   :  { %973 = dma.done.wait [#allocation7], 5200  }
  0x27   :  { %974 = vsyncadd [#allocation7], 4294962096  ;;  %v984_v0 = vmov 0.0   ;;  %vm985_vm0 = vmmov 0   ;;  %v986_v1 = vmov 0   ;;  %v851_v2 = vld [vmem:[#allocation6 + $0x38] sm:$0xff]  }
  0x28   :  { %740 = vmatprep.subr.bf16.mxu0 %v984_v0  ;;  %756 = vmatprep.mubr.msk.bf16.mxu0 %vm985_vm0, %v984_v0  ;;  %55 = vst [vmem:[#allocation2] sm:$0xf] %v986_v1  ;;  %v852_v3 = vld [vmem:[#allocation6 + $0x30] sm:$0xff]   ;;  %v853_v4 = vld [vmem:[#allocation6 + $0x28] sm:$0xff]   ;;  %v56_v5 = vld [vmem:[#allocation3] sm:$0xff]  ;;  %vm58_vm1 = vcmask 44032  }
  0x29   :  { %760 = vmatprep.subr.bf16.mxu1 %v984_v0  ;;  %776 = vmatprep.mubr.msk.bf16.mxu1 %vm985_vm0, %v984_v0  ;;  %v57_v6 = vpack.c.bf16 %v56_v5, %v56_v5  ;;  %v859_v7 = vld [vmem:[#allocation6 + $0x78] sm:$0xff]   ;;  %v854_v8 = vld [vmem:[#allocation6 + $0x20] sm:$0xff]   ;;  %v860_v9 = vld [vmem:[#allocation6 + $0x70] sm:$0xff]   ;;  %s987_s0 = smov [#allocation9]   ;;  %vm632_vm2 = vcmask 48128  }
  0x2a   :  { %741 = vmatpush3.bf16.msra.mxu0 %v851_v2  ;;  %761 = vmatpush3.bf16.msra.mxu1 %v859_v7  ;;  %v855_v10 = vld [vmem:[#allocation6 + $0x18] sm:$0xff]   ;;  %v861_v11 = vld [vmem:[#allocation6 + $0x68] sm:$0xff]   ;;  %v856_v12 = vld [vmem:[#allocation6 + $0x10] sm:$0xff]   ;;  %s640_s2 = sshll.u32 %s987_s0, 4  ;;  %s641_s2 = int_to_ptr.vmem [resolvable:$true] %s640_s2 }
  0x2b   :  { %742 = vmatprep.subr.bf16.mxu0 %v984_v0  ;;  %59 = vst.msk [vmem:[#allocation2] sm:$0xf] %vm58_vm1, %v57_v6  ;;  %762 = vmatprep.subr.bf16.mxu1 %v984_v0  ;;  %v862_v13 = vld [vmem:[#allocation6 + $0x60] sm:$0xff]   ;;  %v857_v14 = vld [vmem:[#allocation6 + $0x8] sm:$0xff]   ;;  %v863_v15 = vld [vmem:[#allocation6 + $0x58] sm:$0xff]   ;;  %s951_s4 = scalar_lea.vmem %s641_s2, 128  ;;  %p956_p2 = scmp.lt.s32.totalorder %s641_s2, %s641_s2 }
  0x2c   :  { %v858_v16 = vld [vmem:[#allocation6] sm:$0xff]   ;;  %v864_v17 = vld [vmem:[#allocation6 + $0x50] sm:$0xff]   ;;  %v865_v19 = vld [vmem:[#allocation6 + $0x48] sm:$0xff]   ;;  %p952_p1 = scmp.ne.s32.totalorder %s641_s2, %s951_s4  ;;  %p957_p3 = scmp.lt.s32.totalorder %s951_s4, %s951_s4 }
  0x2d   :  { %v866_v20 = vld [vmem:[#allocation6 + $0x40] sm:$0xff]   ;;  %v867_v21 = vld [vmem:[#allocation6 + $0xb8] sm:$0xff]   ;;  %v868_v22 = vld [vmem:[#allocation6 + $0xb0] sm:$0xff]  }
  0x2e   :  { %743 = vmatpush3.bf16.msra.mxu0 %v852_v3  ;;  %763 = vmatpush3.bf16.msra.mxu1 %v860_v9  ;;  %v869_v23 = vld [vmem:[#allocation6 + $0xa8] sm:$0xff]   ;;  %v870_v24 = vld [vmem:[#allocation6 + $0xa0] sm:$0xff]   ;;  %v871_v25 = vld [vmem:[#allocation6 + $0x98] sm:$0xff]   ;;  %p958_p4 = por %p957_p3, %p956_p2 }
  0x2f   :  { %744 = vmatprep.subr.bf16.mxu0 %v984_v0  ;;  %764 = vmatprep.subr.bf16.mxu1 %v984_v0  ;;  %v872_v26 = vld [vmem:[#allocation6 + $0x90] sm:$0xff]   ;;  %v650_v27 = vld [vmem:[#allocation8] ss:$0 sm:$0xff]  ;;  %v873_v35 = vld [vmem:[#allocation6 + $0x88] sm:$0xff]  }
  0x30   :  { %v874_v36 = vld [vmem:[#allocation6 + $0x80] sm:$0xff]   ;;  %v875_v37 = vld [vmem:[#allocation6 + $0xf8] sm:$0xff]   ;;  %v876_v38 = vld [vmem:[#allocation6 + $0xf0] sm:$0xff]   ;;  %p959_p5 = pnand %p958_p4, %p952_p1 }
  0x31   :  { %v877_v39 = vld [vmem:[#allocation6 + $0xe8] sm:$0xff]   ;;  %v878_v40 = vld [vmem:[#allocation6 + $0xe0] sm:$0xff]   ;;  %v879_v41 = vld [vmem:[#allocation6 + $0xd8] sm:$0xff]  }
  0x32   :  { %745 = vmatpush3.bf16.msra.mxu0 %v853_v4  ;;  %765 = vmatpush3.bf16.msra.mxu1 %v861_v11  ;;  %v60_v18 = vld [vmem:[#allocation2] sm:$0xf]  ;;  %v659_v43 = vld [vmem:[#allocation8 + $0x1] ss:$0 sm:$0xff]  ;;  %v881_v51 = vld [vmem:[#allocation6 + $0xc8] sm:$0xff]  }
  0x33   :  { %746 = vmatprep.subr.bf16.mxu0 %v984_v0  ;;  %766 = vmatprep.subr.bf16.mxu1 %v984_v0  ;;  %v880_v42 = vld [vmem:[#allocation6 + $0xd0] sm:$0xff]   ;;  %v882_v52 = vld [vmem:[#allocation6 + $0xc0] sm:$0xff]   ;;  %v883_v53 = vld [vmem:[#allocation6 + $0x138] sm:$0xff]  }
  0x34   :  { %v884_v54 = vld [vmem:[#allocation6 + $0x130] sm:$0xff]   ;;  %v885_v55 = vld [vmem:[#allocation6 + $0x128] sm:$0xff]   ;;  %v886_v56 = vld [vmem:[#allocation6 + $0x120] sm:$0xff]  }
  0x35   :  { %v887_v57 = vld [vmem:[#allocation6 + $0x118] sm:$0xff]   ;;  %v888_v58 = vld [vmem:[#allocation6 + $0x110] sm:$0xff]   ;;  %v668_v59 = vld [vmem:[#allocation8 + $0x2] ss:$0 sm:$0xff] }
  0x36   :  { %747 = vmatpush3.bf16.msra.mxu0 %v854_v8  ;;  %767 = vmatpush3.bf16.msra.mxu1 %v862_v13  ;;  %v889_v4 = vld [vmem:[#allocation6 + $0x108] sm:$0xff]   ;;  %v890_v5 = vld [vmem:[#allocation6 + $0x100] sm:$0xff]  }
  0x37   :  { %748 = vmatprep.subr.bf16.mxu0 %v984_v0  ;;  %768 = vmatprep.subr.bf16.mxu1 %v984_v0  ;;  %v677_v6 = vld [vmem:[#allocation8 + $0x3] ss:$0 sm:$0xff] }
  0x3a   :  { %749 = vmatpush3.bf16.msra.mxu0 %v855_v10  ;;  %769 = vmatpush3.bf16.msra.mxu1 %v863_v15 }
  0x3b   :  { %750 = vmatprep.subr.bf16.mxu0 %v984_v0  ;;  %770 = vmatprep.subr.bf16.mxu1 %v984_v0 }
  0x3e   :  { %751 = vmatpush3.bf16.msra.mxu0 %v856_v12  ;;  %771 = vmatpush3.bf16.msra.mxu1 %v864_v17 }
  0x3f   :  { %752 = vmatprep.subr.bf16.mxu0 %v984_v0  ;;  %772 = vmatprep.subr.bf16.mxu1 %v984_v0 }
  0x42   :  { %753 = vmatpush3.bf16.msra.mxu0 %v857_v14  ;;  %773 = vmatpush3.bf16.msra.mxu1 %v865_v19  ;;  %v686_v14 = vld [vmem:[#allocation8 + $0x4] ss:$0 sm:$0xff] }
  0x43   :  { %754 = vmatprep.subr.bf16.mxu0 %v984_v0  ;;  %774 = vmatprep.subr.bf16.mxu1 %v984_v0 }
  0x46   :  { %755 = vmatpush3.bf16.msra.mxu0 %v858_v16  ;;  %775 = vmatpush3.bf16.msra.mxu1 %v866_v20 }
  0x47   :  { %780 = vmatprep.subr.bf16.mxu0 %v984_v0  ;;  %800 = vmatprep.subr.bf16.mxu1 %v984_v0 }
  0x49   :  { %757 = vmatmul.mubr.bf16.vlgmr.msra.gmra.mxu0 %v60_v18 }
  0x4a   :  { %796 = vmatprep.mubr.msk.bf16.mxu0 %vm985_vm0, %v984_v0  ;;  %781 = vmatpush3.bf16.msra.mxu0 %v867_v21 }
  0x4b   :  { %782 = vmatprep.subr.bf16.mxu0 %v984_v0 }
  0x4e   :  { %783 = vmatpush3.bf16.msra.mxu0 %v868_v22 }
  0x4f   :  { %784 = vmatprep.subr.bf16.mxu0 %v984_v0 }
  0x52   :  { %785 = vmatpush3.bf16.msra.mxu0 %v869_v23 }
  0x53   :  { %786 = vmatprep.subr.bf16.mxu0 %v984_v0 }
  0x56   :  { %787 = vmatpush3.bf16.msra.mxu0 %v870_v24 }
  0x57   :  { %788 = vmatprep.subr.bf16.mxu0 %v984_v0 }
  0x5a   :  { %789 = vmatpush3.bf16.msra.mxu0 %v871_v25 }
  0x5b   :  { %790 = vmatprep.subr.bf16.mxu0 %v984_v0 }
  0x5e   :  { %791 = vmatpush3.bf16.msra.mxu0 %v872_v26 }
  0x5f   :  { %792 = vmatprep.subr.bf16.mxu0 %v984_v0 }
  0x62   :  { %793 = vmatpush3.bf16.msra.mxu0 %v873_v35 }
  0x63   :  { %794 = vmatprep.subr.bf16.mxu0 %v984_v0 }
  0x66   :  { %795 = vmatpush3.bf16.msra.mxu0 %v874_v36 }
  0x67   :  { %820 = vmatprep.subr.bf16.mxu0 %v984_v0 }
 0x109   :  { %v166_v28 = vpop.f32.mrf.mxu0 }
 0x10a   :  { %v167_v29 = vadd.f32 %v650_v27, %v166_v28 }
 0x10b   :  { %v758_v30 = vpop.f32.mrf.mxu0 }
 0x10c   :  { %v172_v31 = vmax.f32 %v167_v29, 0.0 }
 0x10d   :  { %v169_v32 = vpop.f32.mrf.mxu0 }
 0x10e   :  { %v173_v33 = vpack.c.bf16 %v172_v31, %v172_v31 }
 0x10f   :  { %v759_v34 = vpop.f32.mrf.mxu0 }
 0x110   :  { %777 = vmatmul.mubr.bf16.vlgmr.msra.gmra.mxu1 %v173_v33 }
 0x111   :  { %816 = vmatprep.mubr.msk.bf16.mxu1 %vm985_vm0, %v984_v0  ;;  %801 = vmatpush3.bf16.msra.mxu1 %v875_v37 }
 0x112   :  { %802 = vmatprep.subr.bf16.mxu1 %v984_v0 }
 0x115   :  { %803 = vmatpush3.bf16.msra.mxu1 %v876_v38 }
 0x116   :  { %804 = vmatprep.subr.bf16.mxu1 %v984_v0 }
 0x119   :  { %805 = vmatpush3.bf16.msra.mxu1 %v877_v39 }
 0x11a   :  { %806 = vmatprep.subr.bf16.mxu1 %v984_v0 }
 0x11d   :  { %807 = vmatpush3.bf16.msra.mxu1 %v878_v40 }
 0x11e   :  { %808 = vmatprep.subr.bf16.mxu1 %v984_v0 }
 0x121   :  { %809 = vmatpush3.bf16.msra.mxu1 %v879_v41 }
 0x122   :  { %810 = vmatprep.subr.bf16.mxu1 %v984_v0 }
 0x125   :  { %811 = vmatpush3.bf16.msra.mxu1 %v880_v42 }
 0x126   :  { %812 = vmatprep.subr.bf16.mxu1 %v984_v0 }
 0x129   :  { %813 = vmatpush3.bf16.msra.mxu1 %v881_v51 }
 0x12a   :  { %814 = vmatprep.subr.bf16.mxu1 %v984_v0 }
 0x12d   :  { %815 = vmatpush3.bf16.msra.mxu1 %v882_v52 }
 0x1d0   :  { %v281_v44 = vpop.f32.mrf.mxu1 }
 0x1d1   :  { %v282_v45 = vadd.f32 %v659_v43, %v281_v44 }
 0x1d2   :  { %v778_v46 = vpop.f32.mrf.mxu1 }
 0x1d3   :  { %v287_v47 = vmax.f32 %v282_v45, 0.0 }
 0x1d4   :  { %v284_v48 = vpop.f32.mrf.mxu1 }
 0x1d5   :  { %v288_v49 = vpack.c.bf16 %v287_v47, %v287_v47 }
 0x1d6   :  { %v779_v50 = vpop.f32.mrf.mxu1 }
 0x1d7   :  { %797 = vmatmul.mubr.bf16.vlgmr.msra.gmra.mxu0 %v288_v49 }
 0x1d8   :  { %836 = vmatprep.mubr.msk.bf16.mxu0 %vm985_vm0, %v984_v0  ;;  %821 = vmatpush3.bf16.msra.mxu0 %v883_v53 }
 0x1d9   :  { %822 = vmatprep.subr.bf16.mxu0 %v984_v0 }
 0x1dc   :  { %823 = vmatpush3.bf16.msra.mxu0 %v884_v54 }
 0x1dd   :  { %824 = vmatprep.subr.bf16.mxu0 %v984_v0 }
 0x1e0   :  { %825 = vmatpush3.bf16.msra.mxu0 %v885_v55 }
 0x1e1   :  { %826 = vmatprep.subr.bf16.mxu0 %v984_v0 }
 0x1e4   :  { %827 = vmatpush3.bf16.msra.mxu0 %v886_v56 }
 0x1e5   :  { %828 = vmatprep.subr.bf16.mxu0 %v984_v0 }
 0x1e8   :  { %829 = vmatpush3.bf16.msra.mxu0 %v887_v57 }
 0x1e9   :  { %830 = vmatprep.subr.bf16.mxu0 %v984_v0 }
 0x1ec   :  { %831 = vmatpush3.bf16.msra.mxu0 %v888_v58 }
 0x1ed   :  { %832 = vmatprep.subr.bf16.mxu0 %v984_v0 }
 0x1f0   :  { %833 = vmatpush3.bf16.msra.mxu0 %v889_v4 }
 0x1f1   :  { %834 = vmatprep.subr.bf16.mxu0 %v984_v0 }
 0x1f4   :  { %835 = vmatpush3.bf16.msra.mxu0 %v890_v5 }
 0x297   :  { %v396_v60 = vpop.f32.mrf.mxu0 }
 0x298   :  { %v397_v61 = vadd.f32 %v668_v59, %v396_v60 }
 0x299   :  { %v798_v62 = vpop.f32.mrf.mxu0 }
 0x29a   :  { %v402_v63 = vmax.f32 %v397_v61, 0.0 }
 0x29b   :  { %v399_v1 = vpop.f32.mrf.mxu0 }
 0x29c   :  { %v403_v2 = vpack.c.bf16 %v402_v63, %v402_v63 }
 0x29d   :  { %v799_v3 = vpop.f32.mrf.mxu0 }
 0x29e   :  { %817 = vmatmul.mubr.bf16.vlgmr.msra.gmra.mxu1 %v403_v2 }
 0x35e   :  { %v511_v7 = vpop.f32.mrf.mxu1 }
 0x35f   :  { %v512_v8 = vadd.f32 %v677_v6, %v511_v7 }
 0x360   :  { %v818_v9 = vpop.f32.mrf.mxu1 }
 0x361   :  { %v517_v10 = vmax.f32 %v512_v8, 0.0 }
 0x362   :  { %v514_v11 = vpop.f32.mrf.mxu1 }
 0x363   :  { %v518_v12 = vpack.c.bf16 %v517_v10, %v517_v10 }
 0x364   :  { %v819_v13 = vpop.f32.mrf.mxu1 }
 0x365   :  { %837 = vmatmul.mubr.bf16.vlgmr.msra.gmra.mxu0 %v518_v12 }
 0x425   :  { %v626_v15 = vpop.f32.mrf.mxu0 }
 0x426   :  { %v627_v16 = vadd.f32 %v686_v14, %v626_v15 }
 0x427   :  { %v838_v17 = vpop.f32.mrf.mxu0 }
 0x428   :  { %633 = vst.msk [vmem:[#allocation9] sm:$0xff] %vm632_vm2, %v627_v16 }
 0x429   :  { %v629_v0 = vpop.f32.mrf.mxu0 }
 0x42a   :  { %962 = shalt.err (!%p959_p5)
}
 0x42b   :  { %643 = dma.vmem_to_hbm [thread:$0]  %s641_s2, 128, %s1073_s3, [#allocation5]   ;;  %v839_v18 = vpop.f32.mrf.mxu0 }
 0x42c   :  { %975 = dma.done.wait [#allocation5], 128  }
 0x42d   :  { %976 = vsyncadd [#allocation5], 4294967168 }
 0x42e   :  { %647 = vsyncpa [#allocation4], 1 }
 0x42f   :  { %648 = vsyncpa [#allocation7], 1 }
 0x430   :  { %649 = vsyncpa [#allocation5], 1 }

</bundles_post_ra>
